<compile_context>
chip_gen: v7x
topology: tpu7x:2x2x1
jax: 0.10.0
libtpu: 0.0.40
codegen_flags: <defaults>
</compile_context>

<pallas_src>
import functools
import math

import numpy as np
import jax
import jax.numpy as jnp
from jax import lax
from jax.experimental import pallas as pl
from jax.experimental.pallas import tpu as pltpu

LN_EPS = 1e-5
_GELU_C = math.sqrt(2.0 / math.pi)

# Tile targets (shrunk automatically for small shapes / non-dividing dims).
ROW_TILE = 256      # M (token) tile
N_TILE = 512        # matmul output-column tile
K_TILE = 512        # matmul contraction tile
FF_TILE = 512       # 4H tile in the fused MLP
Q_TILE = 256        # attention query tile
KV_TILE = 512       # attention key/value tile

# Fits within v7x's 64 MiB physical VMEM (with headroom) and raises the
# default 16/32 MiB scoped limit on v5e/v6e so bigger tiles are allowed.
VMEM_LIMIT_BYTES = 48 * 1024 * 1024


def _pick_tile(dim, target, align):
    """Largest `align`-aligned tile <= target that divides dim, else full dim."""
    if dim <= target:
        return dim
    t = (target // align) * align
    while t >= align:
        if dim % t == 0:
            return t
        t -= align
    return dim


def _layernorm(x, gamma, beta):
    mu = jnp.mean(x, axis=-1, keepdims=True)
    var = jnp.mean(jnp.square(x - mu), axis=-1, keepdims=True)
    return (x - mu) * lax.rsqrt(var + LN_EPS) * gamma + beta


def _gelu_tanh(x):
    # Megatron-style tanh-approx gelu (f32 elementwise).
    return 0.5 * x * (1.0 + jnp.tanh(_GELU_C * (x + 0.044715 * x * x * x)))


# --------------------------------------------------------------------------
# Kernel 1: row-tiled LayerNorm (f32 math, bf16 output for the MXU).
# --------------------------------------------------------------------------
def _layernorm_kernel(x_ref, g_ref, b_ref, o_ref):
    x = x_ref[...].astype(jnp.float32)
    xn = _layernorm(x, g_ref[...].astype(jnp.float32),
                    b_ref[...].astype(jnp.float32))
    o_ref[...] = xn.astype(o_ref.dtype)


def layernorm(x, gamma, beta, out_dtype=jnp.bfloat16):
    M, H = x.shape
    tm = _pick_tile(M, ROW_TILE, 8)
    return pl.pallas_call(
        _layernorm_kernel,
        out_shape=jax.ShapeDtypeStruct((M, H), out_dtype),
        grid=(M // tm,),
        in_specs=[pl.BlockSpec((tm, H), lambda i: (i, 0)),
                  pl.BlockSpec((1, H), lambda i: (0, 0)),
                  pl.BlockSpec((1, H), lambda i: (0, 0))],
        out_specs=pl.BlockSpec((tm, H), lambda i: (i, 0)),
        compiler_params=pltpu.CompilerParams(
            dimension_semantics=("parallel",),
            vmem_limit_bytes=VMEM_LIMIT_BYTES),
        cost_estimate=pl.CostEstimate(
            flops=8 * M * H, transcendentals=M,
            bytes_accessed=M * H * (x.dtype.itemsize
                                    + np.dtype(out_dtype).itemsize)),
    )(x, gamma, beta)


# --------------------------------------------------------------------------
# Kernel 2: tiled matmul + bias (+ optional residual), bf16 in / f32 acc.
# --------------------------------------------------------------------------
def _matmul_kernel(a_ref, w_ref, b_ref, o_ref, acc_ref):
    @pl.when(pl.program_id(2) == 0)
    def _():
        acc_ref[...] = jnp.zeros(acc_ref.shape, acc_ref.dtype)

    acc_ref[...] += jnp.dot(a_ref[...], w_ref[...],
                            preferred_element_type=jnp.float32)

    @pl.when(pl.program_id(2) == pl.num_programs(2) - 1)
    def _():
        o_ref[...] = (acc_ref[...] + b_ref[...]).astype(o_ref.dtype)


def _matmul_res_kernel(a_ref, w_ref, b_ref, r_ref, o_ref, acc_ref):
    @pl.when(pl.program_id(2) == 0)
    def _():
        acc_ref[...] = jnp.zeros(acc_ref.shape, acc_ref.dtype)

    acc_ref[...] += jnp.dot(a_ref[...], w_ref[...],
                            preferred_element_type=jnp.float32)

    @pl.when(pl.program_id(2) == pl.num_programs(2) - 1)
    def _():
        o_ref[...] = (acc_ref[...] + b_ref[...]
                      + r_ref[...].astype(jnp.float32)).astype(o_ref.dtype)


def matmul_bias(a, w, bias, residual=None, out_dtype=jnp.bfloat16):
    M, K = a.shape
    K2, N = w.shape
    assert K == K2
    tm = _pick_tile(M, ROW_TILE, 8)
    tn = _pick_tile(N, N_TILE, 128)
    tk = _pick_tile(K, K_TILE, 128)
    grid = (M // tm, N // tn, K // tk)

    in_specs = [pl.BlockSpec((tm, tk), lambda i, j, k: (i, k)),
                pl.BlockSpec((tk, tn), lambda i, j, k: (k, j)),
                pl.BlockSpec((1, tn), lambda i, j, k: (0, j))]
    args = [a, w, bias]
    kernel = _matmul_kernel
    bytes_accessed = (M * K * a.dtype.itemsize + K * N * w.dtype.itemsize
                      + M * N * np.dtype(out_dtype).itemsize)
    if residual is not None:
        in_specs.append(pl.BlockSpec((tm, tn), lambda i, j, k: (i, j)))
        args.append(residual)
        kernel = _matmul_res_kernel
        bytes_accessed += M * N * residual.dtype.itemsize

    return pl.pallas_call(
        kernel,
        out_shape=jax.ShapeDtypeStruct((M, N), out_dtype),
        grid=grid,
        in_specs=in_specs,
        out_specs=pl.BlockSpec((tm, tn), lambda i, j, k: (i, j)),
        scratch_shapes=[pltpu.VMEM((tm, tn), jnp.float32)],
        compiler_params=pltpu.CompilerParams(
            dimension_semantics=("parallel", "parallel", "arbitrary"),
            vmem_limit_bytes=VMEM_LIMIT_BYTES),
        cost_estimate=pl.CostEstimate(flops=2 * M * N * K, transcendentals=0,
                                      bytes_accessed=bytes_accessed),
    )(*args)


# --------------------------------------------------------------------------
# Kernel 3: flash attention over (batch*heads, q tiles, kv tiles).
# --------------------------------------------------------------------------
def _flash_attn_kernel(q_ref, k_ref, v_ref, o_ref, m_ref, l_ref, acc_ref, *,
                       scale):
    kv = pl.program_id(2)

    @pl.when(kv == 0)
    def _():
        m_ref[...] = jnp.full(m_ref.shape, -jnp.inf, jnp.float32)
        l_ref[...] = jnp.zeros(l_ref.shape, jnp.float32)
        acc_ref[...] = jnp.zeros(acc_ref.shape, jnp.float32)

    q = q_ref[0]                                 # [tq, d] bf16
    k = k_ref[0]                                 # [tkv, d] bf16
    v = v_ref[0]                                 # [tkv, d] bf16
    s = lax.dot_general(q, k, (((1,), (1,)), ((), ())),
                        preferred_element_type=jnp.float32) * scale
    m_prev = m_ref[...]
    m_new = jnp.maximum(m_prev, jnp.max(s, axis=-1, keepdims=True))
    alpha = jnp.exp(m_prev - m_new)
    p = jnp.exp(s - m_new)
    l_ref[...] = alpha * l_ref[...] + jnp.sum(p, axis=-1, keepdims=True)
    acc_ref[...] = alpha * acc_ref[...] + jnp.dot(
        p.astype(v.dtype), v, preferred_element_type=jnp.float32)
    m_ref[...] = m_new

    @pl.when(kv == pl.num_programs(2) - 1)
    def _():
        inv_l = pl.reciprocal(l_ref[...], approx=True)
        o_ref[0] = (acc_ref[...] * inv_l).astype(o_ref.dtype)


def flash_attention(q, k, v, *, scale):
    # q, k, v: [B*heads, S, d] bf16
    BH, S, d = q.shape
    tq = _pick_tile(S, Q_TILE, 8)
    tkv = _pick_tile(S, KV_TILE, 8)
    kernel = functools.partial(_flash_attn_kernel, scale=scale)
    # TODO(synk): no causal/padding mask is applied (ParallelTransformerLayer
    # is called with a single tensor arg in BenchmarkLM, so no mask is given).
    return pl.pallas_call(
        kernel,
        out_shape=jax.ShapeDtypeStruct((BH, S, d), q.dtype),
        grid=(BH, S // tq, S // tkv),
        in_specs=[pl.BlockSpec((1, tq, d), lambda b, qi, ki: (b, qi, 0)),
                  pl.BlockSpec((1, tkv, d), lambda b, qi, ki: (b, ki, 0)),
                  pl.BlockSpec((1, tkv, d), lambda b, qi, ki: (b, ki, 0))],
        out_specs=pl.BlockSpec((1, tq, d), lambda b, qi, ki: (b, qi, 0)),
        scratch_shapes=[pltpu.VMEM((tq, 1), jnp.float32),
                        pltpu.VMEM((tq, 1), jnp.float32),
                        pltpu.VMEM((tq, d), jnp.float32)],
        compiler_params=pltpu.CompilerParams(
            dimension_semantics=("parallel", "parallel", "arbitrary"),
            vmem_limit_bytes=VMEM_LIMIT_BYTES),
        cost_estimate=pl.CostEstimate(
            flops=4 * BH * S * S * d, transcendentals=BH * S * S,
            bytes_accessed=4 * BH * S * d * q.dtype.itemsize),
    )(q, k, v)


# --------------------------------------------------------------------------
# Kernel 4: fused LN2 + MLP (h -> 4h -> h) + residual; [M,4H] never stored.
# --------------------------------------------------------------------------
def _ln_mlp_kernel(y_ref, g_ref, b_ref, w1_ref, b1_ref, w2_ref, b2_ref,
                   o_ref, xn_ref, acc_ref):
    j = pl.program_id(1)

    @pl.when(j == 0)
    def _():
        y = y_ref[...].astype(jnp.float32)
        xn = _layernorm(y, g_ref[...].astype(jnp.float32),
                        b_ref[...].astype(jnp.float32))
        xn_ref[...] = xn.astype(xn_ref.dtype)          # bf16 matmul operand
        acc_ref[...] = jnp.zeros(acc_ref.shape, acc_ref.dtype)

    h1 = jnp.dot(xn_ref[...], w1_ref[...],
                 preferred_element_type=jnp.float32) + b1_ref[...]
    g1 = _gelu_tanh(h1)                                # f32 elementwise (EUP)
    acc_ref[...] += jnp.dot(g1.astype(w2_ref.dtype), w2_ref[...],
                            preferred_element_type=jnp.float32)

    @pl.when(j == pl.num_programs(1) - 1)
    def _():
        o_ref[...] = (y_ref[...].astype(jnp.float32) + acc_ref[...]
                      + b2_ref[...]).astype(o_ref.dtype)


def ln_mlp(y, ln_g, ln_b, w1, b1, w2, b2, out_dtype=jnp.float32):
    M, H = y.shape
    _, FF = w1.shape
    tm = _pick_tile(M, ROW_TILE, 8)
    tff = _pick_tile(FF, FF_TILE, 128)
    return pl.pallas_call(
        _ln_mlp_kernel,
        out_shape=jax.ShapeDtypeStruct((M, H), out_dtype),
        grid=(M // tm, FF // tff),
        in_specs=[pl.BlockSpec((tm, H), lambda i, j: (i, 0)),
                  pl.BlockSpec((1, H), lambda i, j: (0, 0)),
                  pl.BlockSpec((1, H), lambda i, j: (0, 0)),
                  pl.BlockSpec((H, tff), lambda i, j: (0, j)),
                  pl.BlockSpec((1, tff), lambda i, j: (0, j)),
                  pl.BlockSpec((tff, H), lambda i, j: (j, 0)),
                  pl.BlockSpec((1, H), lambda i, j: (0, 0))],
        out_specs=pl.BlockSpec((tm, H), lambda i, j: (i, 0)),
        scratch_shapes=[pltpu.VMEM((tm, H), jnp.bfloat16),   # LN2(y), bf16
                        pltpu.VMEM((tm, H), jnp.float32)],   # w2 accumulator
        compiler_params=pltpu.CompilerParams(
            dimension_semantics=("parallel", "arbitrary"),
            vmem_limit_bytes=VMEM_LIMIT_BYTES),
        cost_estimate=pl.CostEstimate(
            flops=4 * M * H * FF, transcendentals=M * FF,
            bytes_accessed=(2 * H * FF * w1.dtype.itemsize
                            + M * H * (y.dtype.itemsize
                                       + np.dtype(out_dtype).itemsize))),
    )(y, ln_g, ln_b, w1, b1, w2, b2)


# --------------------------------------------------------------------------
# Per-layer wrapper
# --------------------------------------------------------------------------
def prepare_layer_params(p, hidden):
    """Slice the fused QKV weight on the host (free) and cast weights to bf16."""
    # TODO(synk): assumes wqkv is laid out [q_allheads | k_allheads | v_allheads]
    # along the 3H dim; a real Megatron checkpoint interleaves per head.
    wqkv, bqkv = p["wqkv"], p["bqkv"]
    f32, bf16 = jnp.float32, jnp.bfloat16
    return dict(
        ln1_g=p["ln1_g"].astype(f32), ln1_b=p["ln1_b"].astype(f32),
        wq=wqkv[:, :hidden].astype(bf16),
        wk=wqkv[:, hidden:2 * hidden].astype(bf16),
        wv=wqkv[:, 2 * hidden:].astype(bf16),
        bq=bqkv[:, :hidden].astype(f32),
        bk=bqkv[:, hidden:2 * hidden].astype(f32),
        bv=bqkv[:, 2 * hidden:].astype(f32),
        wproj=p["wproj"].astype(bf16), bproj=p["bproj"].astype(f32),
        ln2_g=p["ln2_g"].astype(f32), ln2_b=p["ln2_b"].astype(f32),
        w1=p["w1"].astype(bf16), b1=p["b1"].astype(f32),
        w2=p["w2"].astype(bf16), b2=p["b2"].astype(f32),
    )


def layer_forward(x, lp, *, seq, batch, hidden, n_heads):
    """One transformer layer on a [B*S, H] f32 residual-stream slab."""
    M = batch * seq
    d = hidden // n_heads
    scale = 1.0 / math.sqrt(d)

    # LN1 (bf16 out) + three K=H projections (no lane slicing of a fused qkv).
    xn1 = layernorm(x, lp["ln1_g"], lp["ln1_b"], out_dtype=jnp.bfloat16)
    q = matmul_bias(xn1, lp["wq"], lp["bq"], out_dtype=jnp.bfloat16)
    k = matmul_bias(xn1, lp["wk"], lp["bk"], out_dtype=jnp.bfloat16)
    v = matmul_bias(xn1, lp["wv"], lp["bv"], out_dtype=jnp.bfloat16)

    # [M, H] -> [B*heads, S, d] head-major (wrapper-level layout plumbing).
    def split_heads(t):
        return (t.reshape(batch, seq, n_heads, d)
                 .transpose(0, 2, 1, 3)
                 .reshape(batch * n_heads, seq, d))

    ctx = flash_attention(split_heads(q), split_heads(k), split_heads(v),
                          scale=scale)
    ctx = (ctx.reshape(batch, n_heads, seq, d)
              .transpose(0, 2, 1, 3)
              .reshape(M, hidden))                      # lane-dense [M, H] bf16

    # Single K=H output projection + bias + residual (f32 residual stream).
    y = matmul_bias(ctx, lp["wproj"], lp["bproj"], residual=x,
                    out_dtype=jnp.float32)

    # Fused LN2 + MLP + residual.
    # TODO(synk): inter-layer slab could be carried bf16 / reuse buffers via
    # input_output_aliases for extra HBM-bandwidth savings.
    return ln_mlp(y, lp["ln2_g"], lp["ln2_b"], lp["w1"], lp["b1"],
                  lp["w2"], lp["b2"], out_dtype=jnp.float32)


def benchmark_lm_forward(x_sbh, layers_params, *, n_heads):
    """BenchmarkLM.forward: [S, B, H] -> [S, B, H] through num_l layers."""
    S, B, H = x_sbh.shape
    x = jnp.transpose(x_sbh, (1, 0, 2)).reshape(B * S, H).astype(jnp.float32)
    for p in layers_params:
        lp = prepare_layer_params(p, H)
        x = layer_forward(x, lp, seq=S, batch=B, hidden=H, n_heads=n_heads)
    return jnp.transpose(x.reshape(B, S, H), (1, 0, 2))


# ---------------- deterministic parameter init (no checkpoint load) ---------
def init_params(key, num_layers, hidden):
    params = []
    for _ in range(num_layers):
        key, k_qkv, k_proj, k_w1, k_w2 = jax.random.split(key, 5)
        w = lambda k, shape: 0.02 * jax.random.normal(k, shape, jnp.float32)
        params.append(dict(
            ln1_g=jnp.ones((1, hidden), jnp.float32),
            ln1_b=jnp.zeros((1, hidden), jnp.float32),
            wqkv=w(k_qkv, (hidden, 3 * hidden)),
            bqkv=jnp.zeros((1, 3 * hidden), jnp.float32),
            wproj=w(k_proj, (hidden, hidden)),
            bproj=jnp.zeros((1, hidden), jnp.float32),
            ln2_g=jnp.ones((1, hidden), jnp.float32),
            ln2_b=jnp.zeros((1, hidden), jnp.float32),
            w1=w(k_w1, (hidden, 4 * hidden)),
            b1=jnp.zeros((1, 4 * hidden), jnp.float32),
            w2=w(k_w2, (4 * hidden, hidden)),
            b2=jnp.zeros((1, hidden), jnp.float32),
        ))
    return params


# ---------------- pure-JAX f32 reference (same math, no Pallas) -------------
def _layer_reference(x, p, n_heads, seq, batch, hidden):
    d = hidden // n_heads
    xn = _layernorm(x, p["ln1_g"], p["ln1_b"])
    qkv = xn @ p["wqkv"] + p["bqkv"]
    q, k, v = qkv[:, :hidden], qkv[:, hidden:2 * hidden], qkv[:, 2 * hidden:]

    def heads(t):
        return t.reshape(batch, seq, n_heads, d).transpose(0, 2, 1, 3)

    s = jnp.einsum('bhqd,bhkd->bhqk', heads(q), heads(k)) / math.sqrt(d)
    pmat = jax.nn.softmax(s, axis=-1)
    ctx = jnp.einsum('bhqk,bhkd->bhqd', pmat, heads(v))
    ctx = ctx.transpose(0, 2, 1, 3).reshape(batch * seq, hidden)
    x = x + ctx @ p["wproj"] + p["bproj"]
    xn2 = _layernorm(x, p["ln2_g"], p["ln2_b"])
    mlp = _gelu_tanh(xn2 @ p["w1"] + p["b1"]) @ p["w2"] + p["b2"]
    return x + mlp


def reference_forward(x_sbh, layers_params, *, n_heads):
    S, B, H = x_sbh.shape
    x = jnp.transpose(x_sbh, (1, 0, 2)).reshape(B * S, H)
    for p in layers_params:
        x = _layer_reference(x, p, n_heads, S, B, H)
    return jnp.transpose(x.reshape(B, S, H), (1, 0, 2))


if __name__ == "__main__":
    # Small shapes consistent with gen_rand_inputs(seq, batch, h):
    # seq=8, batch=2, h=32, n=4 heads, num_l=2 layers.
    SEQ, BATCH, HIDDEN, N_HEADS, NUM_L = 8, 2, 32, 4, 2

    key = jax.random.PRNGKey(0)
    key, xkey = jax.random.split(key)
    x = jax.random.uniform(xkey, (SEQ, BATCH, HIDDEN), jnp.float32)  # torch.rand
    params = init_params(key, NUM_L, HIDDEN)

    fwd = jax.jit(functools.partial(benchmark_lm_forward, n_heads=N_HEADS))
    y = jax.block_until_ready(fwd(x, params))

    y_ref = reference_forward(x, params, n_heads=N_HEADS)
    assert y.shape == (SEQ, BATCH, HIDDEN)
    assert bool(jnp.all(jnp.isfinite(y)))
    # bf16 MXU operands (f32 accumulation) => small drift vs f32 reference.
    assert bool(jnp.allclose(y, y_ref, atol=3e-2, rtol=3e-2)), \
        float(jnp.max(jnp.abs(y - y_ref)))

    # TODO(synk): reduce_grad / torch.distributed all-reduce, activation
    # checkpointing and mpu tensor-parallel init are training/distributed
    # machinery with no effect on forward values; not modeled here.
    print("KERNEL_OK")
</pallas_src>

<mosaic_0001>
module attributes {stable_mosaic.version = 11 : i64} {
  func.func @_layernorm_kernel(%arg0: i32, %arg1: memref<16x32xf32, #tpu.memory_space<vmem>>, %arg2: memref<1x32xf32, #tpu.memory_space<vmem>>, %arg3: memref<1x32xf32, #tpu.memory_space<vmem>>, %arg4: memref<16x32xbf16, #tpu.memory_space<vmem>>) attributes {dimension_semantics = [#tpu.dimension_semantics<parallel>], iteration_bounds = array<i64: 1>, scalar_prefetch = 0 : i64, scratch_operands = 0 : i64, tpu.core_type = #tpu.core_type<tc>, window_params = [{transform_indices = @transform_0, window_bounds = array<i64: 16, 32>}, {pipeline_mode = #tpu.pipeline_mode<synchronous>, transform_indices = @transform_1, window_bounds = array<i64: 1, 32>}, {pipeline_mode = #tpu.pipeline_mode<synchronous>, transform_indices = @transform_2, window_bounds = array<i64: 1, 32>}, {transform_indices = @transform_3, window_bounds = array<i64: 16, 32>}]} {
    %c0 = arith.constant 0 : index
    %c0_0 = arith.constant 0 : index
    %0 = vector.load %arg1[%c0, %c0_0] : memref<16x32xf32, #tpu.memory_space<vmem>>, vector<16x32xf32>
    %c0_1 = arith.constant 0 : index
    %c0_2 = arith.constant 0 : index
    %1 = vector.load %arg2[%c0_1, %c0_2] : memref<1x32xf32, #tpu.memory_space<vmem>>, vector<1x32xf32>
    %c0_3 = arith.constant 0 : index
    %c0_4 = arith.constant 0 : index
    %2 = vector.load %arg3[%c0_3, %c0_4] : memref<1x32xf32, #tpu.memory_space<vmem>>, vector<1x32xf32>
    %cst = arith.constant dense<0.000000e+00> : vector<16xf32>
    %3 = vector.multi_reduction <add>, %0, %cst [1] : vector<16x32xf32> to vector<16xf32>
    %4 = vector.shape_cast %3 : vector<16xf32> to vector<16x1xf32>
    %cst_5 = arith.constant 3.200000e+01 : f32
    %5 = vector.broadcast %cst_5 : f32 to vector<16x1xf32>
    %6 = arith.divf %4, %5 : vector<16x1xf32>
    %7 = vector.broadcast %6 : vector<16x1xf32> to vector<16x32xf32>
    %8 = arith.subf %0, %7 : vector<16x32xf32>
    %9 = arith.mulf %8, %8 : vector<16x32xf32>
    %cst_6 = arith.constant dense<0.000000e+00> : vector<16xf32>
    %10 = vector.multi_reduction <add>, %9, %cst_6 [1] : vector<16x32xf32> to vector<16xf32>
    %11 = vector.shape_cast %10 : vector<16xf32> to vector<16x1xf32>
    %cst_7 = arith.constant 3.200000e+01 : f32
    %12 = vector.broadcast %cst_7 : f32 to vector<16x1xf32>
    %13 = arith.divf %11, %12 : vector<16x1xf32>
    %14 = vector.broadcast %6 : vector<16x1xf32> to vector<16x32xf32>
    %15 = arith.subf %0, %14 : vector<16x32xf32>
    %cst_8 = arith.constant 9.99999974E-6 : f32
    %16 = vector.broadcast %cst_8 : f32 to vector<16x1xf32>
    %17 = arith.addf %13, %16 : vector<16x1xf32>
    %18 = math.rsqrt %17 : vector<16x1xf32>
    %19 = vector.broadcast %18 : vector<16x1xf32> to vector<16x32xf32>
    %20 = arith.mulf %15, %19 : vector<16x32xf32>
    %21 = vector.broadcast %1 : vector<1x32xf32> to vector<16x32xf32>
    %22 = arith.mulf %20, %21 : vector<16x32xf32>
    %23 = vector.broadcast %2 : vector<1x32xf32> to vector<16x32xf32>
    %24 = arith.addf %22, %23 : vector<16x32xf32>
    %25 = arith.truncf %24 : vector<16x32xf32> to vector<16x32xbf16>
    %c0_9 = arith.constant 0 : index
    %c0_10 = arith.constant 0 : index
    %26 = vector.load %arg4[%c0_9, %c0_10] : memref<16x32xbf16, #tpu.memory_space<vmem>>, vector<16x32xbf16>
    tpu.vector_store %arg4[%c0_9, %c0_10], %25 {strides = array<i32>} : memref<16x32xbf16, #tpu.memory_space<vmem>>, vector<16x32xbf16>,
    return
  }
  func.func @transform_0(%arg0: i32) -> (i32, i32) {
    %c0_i32 = arith.constant 0 : i32
    %c0_i32_0 = arith.constant 0 : i32
    return %arg0, %c0_i32 : i32, i32
  }
  func.func @transform_1(%arg0: i32) -> (i32, i32) {
    %c0_i32 = arith.constant 0 : i32
    %c0_i32_0 = arith.constant 0 : i32
    %c0_i32_1 = arith.constant 0 : i32
    return %c0_i32, %c0_i32_0 : i32, i32
  }
  func.func @transform_2(%arg0: i32) -> (i32, i32) {
    %c0_i32 = arith.constant 0 : i32
    %c0_i32_0 = arith.constant 0 : i32
    %c0_i32_1 = arith.constant 0 : i32
    return %c0_i32, %c0_i32_0 : i32, i32
  }
  func.func @transform_3(%arg0: i32) -> (i32, i32) {
    %c0_i32 = arith.constant 0 : i32
    %c0_i32_0 = arith.constant 0 : i32
    return %arg0, %c0_i32 : i32, i32
  }
}

module attributes {stable_mosaic.version = 11 : i64} {
  func.func @_matmul_kernel(%arg0: i32, %arg1: i32, %arg2: i32, %arg3: memref<16x32xbf16, #tpu.memory_space<vmem>>, %arg4: memref<32x32xbf16, #tpu.memory_space<vmem>>, %arg5: memref<1x32xf32, #tpu.memory_space<vmem>>, %arg6: memref<16x32xbf16, #tpu.memory_space<vmem>>, %arg7: memref<16x32xf32, #tpu.memory_space<vmem>>) attributes {dimension_semantics = [#tpu.dimension_semantics<parallel>, #tpu.dimension_semantics<parallel>, #tpu.dimension_semantics<arbitrary>], iteration_bounds = array<i64: 1, 1, 1>, scalar_prefetch = 0 : i64, scratch_operands = 1 : i64, tpu.core_type = #tpu.core_type<tc>, window_params = [{transform_indices = @transform_0, window_bounds = array<i64: 16, 32>}, {transform_indices = @transform_1, window_bounds = array<i64: 32, 32>}, {transform_indices = @transform_2, window_bounds = array<i64: 1, 32>}, {transform_indices = @transform_3, window_bounds = array<i64: 16, 32>}]} {
    %c0_i32 = arith.constant 0 : i32
    %0 = arith.cmpi eq, %arg2, %c0_i32 : i32
    %1 = arith.extui %0 : i1 to i32
    %c0_i32_0 = arith.constant 0 : i32
    %2 = arith.cmpi ne, %1, %c0_i32_0 : i32
    scf.if %2 {
      %cst_10 = arith.constant 0.000000e+00 : f32
      %12 = vector.broadcast %cst_10 : f32 to vector<16x32xf32>
      %c0_11 = arith.constant 0 : index
      %c0_12 = arith.constant 0 : index
      %13 = vector.load %arg7[%c0_11, %c0_12] : memref<16x32xf32, #tpu.memory_space<vmem>>, vector<16x32xf32>
      tpu.vector_store %arg7[%c0_11, %c0_12], %12 {strides = array<i32>} : memref<16x32xf32, #tpu.memory_space<vmem>>, vector<16x32xf32>,
    } else {
    }
    %c0 = arith.constant 0 : index
    %c0_1 = arith.constant 0 : index
    %3 = vector.load %arg7[%c0, %c0_1] : memref<16x32xf32, #tpu.memory_space<vmem>>, vector<16x32xf32>
    %c0_2 = arith.constant 0 : index
    %c0_3 = arith.constant 0 : index
    %4 = vector.load %arg3[%c0_2, %c0_3] : memref<16x32xbf16, #tpu.memory_space<vmem>>, vector<16x32xbf16>
    %c0_4 = arith.constant 0 : index
    %c0_5 = arith.constant 0 : index
    %5 = vector.load %arg4[%c0_4, %c0_5] : memref<32x32xbf16, #tpu.memory_space<vmem>>, vector<32x32xbf16>
    %cst = arith.constant dense<0.000000e+00> : vector<16x32xf32>
    %6 = tpu.matmul %4, %5, %cst {dimension_numbers = #tpu.dot_dimension_numbers<[1], [0], [0], [1], [0, 0, 1, 1], [], []>} : vector<16x32xbf16>, vector<32x32xbf16>, vector<16x32xf32> -> vector<16x32xf32>
    %7 = arith.addf %3, %6 : vector<16x32xf32>
    %c0_6 = arith.constant 0 : index
    %c0_7 = arith.constant 0 : index
    %8 = vector.load %arg7[%c0_6, %c0_7] : memref<16x32xf32, #tpu.memory_space<vmem>>, vector<16x32xf32>
    tpu.vector_store %arg7[%c0_6, %c0_7], %7 {strides = array<i32>} : memref<16x32xf32, #tpu.memory_space<vmem>>, vector<16x32xf32>,
    %c0_i32_8 = arith.constant 0 : i32
    %9 = arith.cmpi eq, %arg2, %c0_i32_8 : i32
    %10 = arith.extui %9 : i1 to i32
    %c0_i32_9 = arith.constant 0 : i32
    %11 = arith.cmpi ne, %10, %c0_i32_9 : i32
    scf.if %11 {
      %c0_10 = arith.constant 0 : index
      %c0_11 = arith.constant 0 : index
      %12 = vector.load %arg7[%c0_10, %c0_11] : memref<16x32xf32, #tpu.memory_space<vmem>>, vector<16x32xf32>
      %c0_12 = arith.constant 0 : index
      %c0_13 = arith.constant 0 : index
      %13 = vector.load %arg5[%c0_12, %c0_13] : memref<1x32xf32, #tpu.memory_space<vmem>>, vector<1x32xf32>
      %14 = vector.broadcast %13 : vector<1x32xf32> to vector<16x32xf32>
      %15 = arith.addf %12, %14 : vector<16x32xf32>
      %16 = arith.truncf %15 : vector<16x32xf32> to vector<16x32xbf16>
      %c0_14 = arith.constant 0 : index
      %c0_15 = arith.constant 0 : index
      %17 = vector.load %arg6[%c0_14, %c0_15] : memref<16x32xbf16, #tpu.memory_space<vmem>>, vector<16x32xbf16>
      tpu.vector_store %arg6[%c0_14, %c0_15], %16 {strides = array<i32>} : memref<16x32xbf16, #tpu.memory_space<vmem>>, vector<16x32xbf16>,
    } else {
    }
    return
  }
  func.func @transform_0(%arg0: i32, %arg1: i32, %arg2: i32) -> (i32, i32) {
    %c0_i32 = arith.constant 0 : i32
    return %arg0, %arg2 : i32, i32
  }
  func.func @transform_1(%arg0: i32, %arg1: i32, %arg2: i32) -> (i32, i32) {
    %c0_i32 = arith.constant 0 : i32
    return %arg2, %arg1 : i32, i32
  }
  func.func @transform_2(%arg0: i32, %arg1: i32, %arg2: i32) -> (i32, i32) {
    %c0_i32 = arith.constant 0 : i32
    %c0_i32_0 = arith.constant 0 : i32
    return %c0_i32, %arg1 : i32, i32
  }
  func.func @transform_3(%arg0: i32, %arg1: i32, %arg2: i32) -> (i32, i32) {
    %c0_i32 = arith.constant 0 : i32
    return %arg0, %arg1 : i32, i32
  }
}

module attributes {stable_mosaic.version = 11 : i64} {
  func.func @_flash_attn_kernel(%arg0: i32, %arg1: i32, %arg2: i32, %arg3: memref<1x8x8xbf16, #tpu.memory_space<vmem>>, %arg4: memref<1x8x8xbf16, #tpu.memory_space<vmem>>, %arg5: memref<1x8x8xbf16, #tpu.memory_space<vmem>>, %arg6: memref<1x8x8xbf16, #tpu.memory_space<vmem>>, %arg7: memref<8x1xf32, #tpu.memory_space<vmem>>, %arg8: memref<8x1xf32, #tpu.memory_space<vmem>>, %arg9: memref<8x8xf32, #tpu.memory_space<vmem>>) attributes {dimension_semantics = [#tpu.dimension_semantics<parallel>, #tpu.dimension_semantics<parallel>, #tpu.dimension_semantics<arbitrary>], iteration_bounds = array<i64: 8, 1, 1>, scalar_prefetch = 0 : i64, scratch_operands = 3 : i64, tpu.core_type = #tpu.core_type<tc>, window_params = [{transform_indices = @transform_0, window_bounds = array<i64: 1, 8, 8>}, {transform_indices = @transform_1, window_bounds = array<i64: 1, 8, 8>}, {transform_indices = @transform_2, window_bounds = array<i64: 1, 8, 8>}, {transform_indices = @transform_3, window_bounds = array<i64: 1, 8, 8>}]} {
    %c0_i32 = arith.constant 0 : i32
    %0 = arith.cmpi eq, %arg2, %c0_i32 : i32
    %1 = arith.extui %0 : i1 to i32
    %c0_i32_0 = arith.constant 0 : i32
    %2 = arith.cmpi ne, %1, %c0_i32_0 : i32
    scf.if %2 {
      %cst_27 = arith.constant 0xFF800000 : f32
      %38 = vector.broadcast %cst_27 : f32 to vector<8x1xf32>
      %c0_28 = arith.constant 0 : index
      %c0_29 = arith.constant 0 : index
      %39 = vector.load %arg7[%c0_28, %c0_29] : memref<8x1xf32, #tpu.memory_space<vmem>>, vector<8x1xf32>
      tpu.vector_store %arg7[%c0_28, %c0_29], %38 {strides = array<i32>} : memref<8x1xf32, #tpu.memory_space<vmem>>, vector<8x1xf32>,
      %cst_30 = arith.constant 0.000000e+00 : f32
      %40 = vector.broadcast %cst_30 : f32 to vector<8x1xf32>
      %c0_31 = arith.constant 0 : index
      %c0_32 = arith.constant 0 : index
      %41 = vector.load %arg8[%c0_31, %c0_32] : memref<8x1xf32, #tpu.memory_space<vmem>>, vector<8x1xf32>
      tpu.vector_store %arg8[%c0_31, %c0_32], %40 {strides = array<i32>} : memref<8x1xf32, #tpu.memory_space<vmem>>, vector<8x1xf32>,
      %cst_33 = arith.constant 0.000000e+00 : f32
      %42 = vector.broadcast %cst_33 : f32 to vector<8x8xf32>
      %c0_34 = arith.constant 0 : index
      %c0_35 = arith.constant 0 : index
      %43 = vector.load %arg9[%c0_34, %c0_35] : memref<8x8xf32, #tpu.memory_space<vmem>>, vector<8x8xf32>
      tpu.vector_store %arg9[%c0_34, %c0_35], %42 {strides = array<i32>} : memref<8x8xf32, #tpu.memory_space<vmem>>, vector<8x8xf32>,
    } else {
    }
    %c0 = arith.constant 0 : index
    %c0_1 = arith.constant 0 : index
    %c0_2 = arith.constant 0 : index
    %3 = vector.load %arg3[%c0, %c0_1, %c0_2] : memref<1x8x8xbf16, #tpu.memory_space<vmem>>, vector<1x8x8xbf16>
    %4 = vector.shape_cast %3 : vector<1x8x8xbf16> to vector<8x8xbf16>
    %c0_3 = arith.constant 0 : index
    %c0_4 = arith.constant 0 : index
    %c0_5 = arith.constant 0 : index
    %5 = vector.load %arg4[%c0_3, %c0_4, %c0_5] : memref<1x8x8xbf16, #tpu.memory_space<vmem>>, vector<1x8x8xbf16>
    %6 = vector.shape_cast %5 : vector<1x8x8xbf16> to vector<8x8xbf16>
    %c0_6 = arith.constant 0 : index
    %c0_7 = arith.constant 0 : index
    %c0_8 = arith.constant 0 : index
    %7 = vector.load %arg5[%c0_6, %c0_7, %c0_8] : memref<1x8x8xbf16, #tpu.memory_space<vmem>>, vector<1x8x8xbf16>
    %8 = vector.shape_cast %7 : vector<1x8x8xbf16> to vector<8x8xbf16>
    %cst = arith.constant dense<0.000000e+00> : vector<8x8xf32>
    %9 = tpu.matmul %4, %6, %cst {dimension_numbers = #tpu.dot_dimension_numbers<[1], [1], [0], [0], [0, 0, 1, 0], [], []>} : vector<8x8xbf16>, vector<8x8xbf16>, vector<8x8xf32> -> vector<8x8xf32>
    %cst_9 = arith.constant 0.353553385 : f32
    %10 = vector.broadcast %cst_9 : f32 to vector<8x8xf32>
    %11 = arith.mulf %9, %10 : vector<8x8xf32>
    %c0_10 = arith.constant 0 : index
    %c0_11 = arith.constant 0 : index
    %12 = vector.load %arg7[%c0_10, %c0_11] : memref<8x1xf32, #tpu.memory_space<vmem>>, vector<8x1xf32>
    %cst_12 = arith.constant dense<0xFF800000> : vector<8xf32>
    %13 = vector.multi_reduction <maximumf>, %11, %cst_12 [1] : vector<8x8xf32> to vector<8xf32>
    %14 = vector.shape_cast %13 : vector<8xf32> to vector<8x1xf32>
    %15 = arith.maximumf %12, %14 : vector<8x1xf32>
    %16 = arith.subf %12, %15 : vector<8x1xf32>
    %17 = math.exp %16 : vector<8x1xf32>
    %18 = vector.broadcast %15 : vector<8x1xf32> to vector<8x8xf32>
    %19 = arith.subf %11, %18 : vector<8x8xf32>
    %20 = math.exp %19 : vector<8x8xf32>
    %c0_13 = arith.constant 0 : index
    %c0_14 = arith.constant 0 : index
    %21 = vector.load %arg8[%c0_13, %c0_14] : memref<8x1xf32, #tpu.memory_space<vmem>>, vector<8x1xf32>
    %22 = arith.mulf %17, %21 : vector<8x1xf32>
    %cst_15 = arith.constant dense<0.000000e+00> : vector<8xf32>
    %23 = vector.multi_reduction <add>, %20, %cst_15 [1] : vector<8x8xf32> to vector<8xf32>
    %24 = vector.shape_cast %23 : vector<8xf32> to vector<8x1xf32>
    %25 = arith.addf %22, %24 : vector<8x1xf32>
    %c0_16 = arith.constant 0 : index
    %c0_17 = arith.constant 0 : index
    %26 = vector.load %arg8[%c0_16, %c0_17] : memref<8x1xf32, #tpu.memory_space<vmem>>, vector<8x1xf32>
    tpu.vector_store %arg8[%c0_16, %c0_17], %25 {strides = array<i32>} : memref<8x1xf32, #tpu.memory_space<vmem>>, vector<8x1xf32>,
    %c0_18 = arith.constant 0 : index
    %c0_19 = arith.constant 0 : index
    %27 = vector.load %arg9[%c0_18, %c0_19] : memref<8x8xf32, #tpu.memory_space<vmem>>, vector<8x8xf32>
    %28 = vector.broadcast %17 : vector<8x1xf32> to vector<8x8xf32>
    %29 = arith.mulf %28, %27 : vector<8x8xf32>
    %30 = arith.truncf %20 : vector<8x8xf32> to vector<8x8xbf16>
    %cst_20 = arith.constant dense<0.000000e+00> : vector<8x8xf32>
    %31 = tpu.matmul %30, %8, %cst_20 {dimension_numbers = #tpu.dot_dimension_numbers<[1], [0], [0], [1], [0, 0, 1, 1], [], []>} : vector<8x8xbf16>, vector<8x8xbf16>, vector<8x8xf32> -> vector<8x8xf32>
    %32 = arith.addf %29, %31 : vector<8x8xf32>
    %c0_21 = arith.constant 0 : index
    %c0_22 = arith.constant 0 : index
    %33 = vector.load %arg9[%c0_21, %c0_22] : memref<8x8xf32, #tpu.memory_space<vmem>>, vector<8x8xf32>
    tpu.vector_store %arg9[%c0_21, %c0_22], %32 {strides = array<i32>} : memref<8x8xf32, #tpu.memory_space<vmem>>, vector<8x8xf32>,
    %c0_23 = arith.constant 0 : index
    %c0_24 = arith.constant 0 : index
    %34 = vector.load %arg7[%c0_23, %c0_24] : memref<8x1xf32, #tpu.memory_space<vmem>>, vector<8x1xf32>
    tpu.vector_store %arg7[%c0_23, %c0_24], %15 {strides = array<i32>} : memref<8x1xf32, #tpu.memory_space<vmem>>, vector<8x1xf32>,
    %c0_i32_25 = arith.constant 0 : i32
    %35 = arith.cmpi eq, %arg2, %c0_i32_25 : i32
    %36 = arith.extui %35 : i1 to i32
    %c0_i32_26 = arith.constant 0 : i32
    %37 = arith.cmpi ne, %36, %c0_i32_26 : i32
    scf.if %37 {
      %c0_27 = arith.constant 0 : index
      %c0_28 = arith.constant 0 : index
      %38 = vector.load %arg8[%c0_27, %c0_28] : memref<8x1xf32, #tpu.memory_space<vmem>>, vector<8x1xf32>
      %39 = tpu.reciprocal %38 {approx = true} : vector<8x1xf32> -> vector<8x1xf32>
      %c0_29 = arith.constant 0 : index
      %c0_30 = arith.constant 0 : index
      %40 = vector.load %arg9[%c0_29, %c0_30] : memref<8x8xf32, #tpu.memory_space<vmem>>, vector<8x8xf32>
      %41 = vector.broadcast %39 : vector<8x1xf32> to vector<8x8xf32>
      %42 = arith.mulf %40, %41 : vector<8x8xf32>
      %43 = arith.truncf %42 : vector<8x8xf32> to vector<8x8xbf16>
      %c0_31 = arith.constant 0 : index
      %c0_32 = arith.constant 0 : index
      %c0_33 = arith.constant 0 : index
      %44 = vector.load %arg6[%c0_31, %c0_32, %c0_33] : memref<1x8x8xbf16, #tpu.memory_space<vmem>>, vector<1x8x8xbf16>
      %45 = vector.shape_cast %44 : vector<1x8x8xbf16> to vector<8x8xbf16>
      %46 = vector.shape_cast %43 : vector<8x8xbf16> to vector<1x8x8xbf16>
      tpu.vector_store %arg6[%c0_31, %c0_32, %c0_33], %46 {strides = array<i32>} : memref<1x8x8xbf16, #tpu.memory_space<vmem>>, vector<1x8x8xbf16>,
    } else {
    }
    return
  }
  func.func @transform_0(%arg0: i32, %arg1: i32, %arg2: i32) -> (i32, i32, i32) {
    %c0_i32 = arith.constant 0 : i32
    %c0_i32_0 = arith.constant 0 : i32
    return %arg0, %arg1, %c0_i32 : i32, i32, i32
  }
  func.func @transform_1(%arg0: i32, %arg1: i32, %arg2: i32) -> (i32, i32, i32) {
    %c0_i32 = arith.constant 0 : i32
    %c0_i32_0 = arith.constant 0 : i32
    return %arg0, %arg2, %c0_i32 : i32, i32, i32
  }
  func.func @transform_2(%arg0: i32, %arg1: i32, %arg2: i32) -> (i32, i32, i32) {
    %c0_i32 = arith.constant 0 : i32
    %c0_i32_0 = arith.constant 0 : i32
    return %arg0, %arg2, %c0_i32 : i32, i32, i32
  }
  func.func @transform_3(%arg0: i32, %arg1: i32, %arg2: i32) -> (i32, i32, i32) {
    %c0_i32 = arith.constant 0 : i32
    %c0_i32_0 = arith.constant 0 : i32
    return %arg0, %arg1, %c0_i32 : i32, i32, i32
  }
}

module attributes {stable_mosaic.version = 11 : i64} {
  func.func @_matmul_res_kernel(%arg0: i32, %arg1: i32, %arg2: i32, %arg3: memref<16x32xbf16, #tpu.memory_space<vmem>>, %arg4: memref<32x32xbf16, #tpu.memory_space<vmem>>, %arg5: memref<1x32xf32, #tpu.memory_space<vmem>>, %arg6: memref<16x32xf32, #tpu.memory_space<vmem>>, %arg7: memref<16x32xf32, #tpu.memory_space<vmem>>, %arg8: memref<16x32xf32, #tpu.memory_space<vmem>>) attributes {dimension_semantics = [#tpu.dimension_semantics<parallel>, #tpu.dimension_semantics<parallel>, #tpu.dimension_semantics<arbitrary>], iteration_bounds = array<i64: 1, 1, 1>, scalar_prefetch = 0 : i64, scratch_operands = 1 : i64, tpu.core_type = #tpu.core_type<tc>, window_params = [{transform_indices = @transform_0, window_bounds = array<i64: 16, 32>}, {transform_indices = @transform_1, window_bounds = array<i64: 32, 32>}, {transform_indices = @transform_2, window_bounds = array<i64: 1, 32>}, {transform_indices = @transform_3, window_bounds = array<i64: 16, 32>}, {transform_indices = @transform_4, window_bounds = array<i64: 16, 32>}]} {
    %c0_i32 = arith.constant 0 : i32
    %0 = arith.cmpi eq, %arg2, %c0_i32 : i32
    %1 = arith.extui %0 : i1 to i32
    %c0_i32_0 = arith.constant 0 : i32
    %2 = arith.cmpi ne, %1, %c0_i32_0 : i32
    scf.if %2 {
      %cst_10 = arith.constant 0.000000e+00 : f32
      %12 = vector.broadcast %cst_10 : f32 to vector<16x32xf32>
      %c0_11 = arith.constant 0 : index
      %c0_12 = arith.constant 0 : index
      %13 = vector.load %arg8[%c0_11, %c0_12] : memref<16x32xf32, #tpu.memory_space<vmem>>, vector<16x32xf32>
      tpu.vector_store %arg8[%c0_11, %c0_12], %12 {strides = array<i32>} : memref<16x32xf32, #tpu.memory_space<vmem>>, vector<16x32xf32>,
    } else {
    }
    %c0 = arith.constant 0 : index
    %c0_1 = arith.constant 0 : index
    %3 = vector.load %arg8[%c0, %c0_1] : memref<16x32xf32, #tpu.memory_space<vmem>>, vector<16x32xf32>
    %c0_2 = arith.constant 0 : index
    %c0_3 = arith.constant 0 : index
    %4 = vector.load %arg3[%c0_2, %c0_3] : memref<16x32xbf16, #tpu.memory_space<vmem>>, vector<16x32xbf16>
    %c0_4 = arith.constant 0 : index
    %c0_5 = arith.constant 0 : index
    %5 = vector.load %arg4[%c0_4, %c0_5] : memref<32x32xbf16, #tpu.memory_space<vmem>>, vector<32x32xbf16>
    %cst = arith.constant dense<0.000000e+00> : vector<16x32xf32>
    %6 = tpu.matmul %4, %5, %cst {dimension_numbers = #tpu.dot_dimension_numbers<[1], [0], [0], [1], [0, 0, 1, 1], [], []>} : vector<16x32xbf16>, vector<32x32xbf16>, vector<16x32xf32> -> vector<16x32xf32>
    %7 = arith.addf %3, %6 : vector<16x32xf32>
    %c0_6 = arith.constant 0 : index
    %c0_7 = arith.constant 0 : index
    %8 = vector.load %arg8[%c0_6, %c0_7] : memref<16x32xf32, #tpu.memory_space<vmem>>, vector<16x32xf32>
    tpu.vector_store %arg8[%c0_6, %c0_7], %7 {strides = array<i32>} : memref<16x32xf32, #tpu.memory_space<vmem>>, vector<16x32xf32>,
    %c0_i32_8 = arith.constant 0 : i32
    %9 = arith.cmpi eq, %arg2, %c0_i32_8 : i32
    %10 = arith.extui %9 : i1 to i32
    %c0_i32_9 = arith.constant 0 : i32
    %11 = arith.cmpi ne, %10, %c0_i32_9 : i32
    scf.if %11 {
      %c0_10 = arith.constant 0 : index
      %c0_11 = arith.constant 0 : index
      %12 = vector.load %arg8[%c0_10, %c0_11] : memref<16x32xf32, #tpu.memory_space<vmem>>, vector<16x32xf32>
      %c0_12 = arith.constant 0 : index
      %c0_13 = arith.constant 0 : index
      %13 = vector.load %arg5[%c0_12, %c0_13] : memref<1x32xf32, #tpu.memory_space<vmem>>, vector<1x32xf32>
      %14 = vector.broadcast %13 : vector<1x32xf32> to vector<16x32xf32>
      %15 = arith.addf %12, %14 : vector<16x32xf32>
      %c0_14 = arith.constant 0 : index
      %c0_15 = arith.constant 0 : index
      %16 = vector.load %arg6[%c0_14, %c0_15] : memref<16x32xf32, #tpu.memory_space<vmem>>, vector<16x32xf32>
      %17 = arith.addf %15, %16 : vector<16x32xf32>
      %c0_16 = arith.constant 0 : index
      %c0_17 = arith.constant 0 : index
      %18 = vector.load %arg7[%c0_16, %c0_17] : memref<16x32xf32, #tpu.memory_space<vmem>>, vector<16x32xf32>
      tpu.vector_store %arg7[%c0_16, %c0_17], %17 {strides = array<i32>} : memref<16x32xf32, #tpu.memory_space<vmem>>, vector<16x32xf32>,
    } else {
    }
    return
  }
  func.func @transform_0(%arg0: i32, %arg1: i32, %arg2: i32) -> (i32, i32) {
    %c0_i32 = arith.constant 0 : i32
    return %arg0, %arg2 : i32, i32
  }
  func.func @transform_1(%arg0: i32, %arg1: i32, %arg2: i32) -> (i32, i32) {
    %c0_i32 = arith.constant 0 : i32
    return %arg2, %arg1 : i32, i32
  }
  func.func @transform_2(%arg0: i32, %arg1: i32, %arg2: i32) -> (i32, i32) {
    %c0_i32 = arith.constant 0 : i32
    %c0_i32_0 = arith.constant 0 : i32
    return %c0_i32, %arg1 : i32, i32
  }
  func.func @transform_3(%arg0: i32, %arg1: i32, %arg2: i32) -> (i32, i32) {
    %c0_i32 = arith.constant 0 : i32
    return %arg0, %arg1 : i32, i32
  }
  func.func @transform_4(%arg0: i32, %arg1: i32, %arg2: i32) -> (i32, i32) {
    %c0_i32 = arith.constant 0 : i32
    return %arg0, %arg1 : i32, i32
  }
}

module attributes {stable_mosaic.version = 11 : i64} {
  func.func @_ln_mlp_kernel(%arg0: i32, %arg1: i32, %arg2: memref<16x32xf32, #tpu.memory_space<vmem>>, %arg3: memref<1x32xf32, #tpu.memory_space<vmem>>, %arg4: memref<1x32xf32, #tpu.memory_space<vmem>>, %arg5: memref<32x128xbf16, #tpu.memory_space<vmem>>, %arg6: memref<1x128xf32, #tpu.memory_space<vmem>>, %arg7: memref<128x32xbf16, #tpu.memory_space<vmem>>, %arg8: memref<1x32xf32, #tpu.memory_space<vmem>>, %arg9: memref<16x32xf32, #tpu.memory_space<vmem>>, %arg10: memref<16x32xbf16, #tpu.memory_space<vmem>>, %arg11: memref<16x32xf32, #tpu.memory_space<vmem>>) attributes {dimension_semantics = [#tpu.dimension_semantics<parallel>, #tpu.dimension_semantics<arbitrary>], iteration_bounds = array<i64: 1, 1>, scalar_prefetch = 0 : i64, scratch_operands = 2 : i64, tpu.core_type = #tpu.core_type<tc>, window_params = [{transform_indices = @transform_0, window_bounds = array<i64: 16, 32>}, {pipeline_mode = #tpu.pipeline_mode<synchronous>, transform_indices = @transform_1, window_bounds = array<i64: 1, 32>}, {pipeline_mode = #tpu.pipeline_mode<synchronous>, transform_indices = @transform_2, window_bounds = array<i64: 1, 32>}, {transform_indices = @transform_3, window_bounds = array<i64: 32, 128>}, {transform_indices = @transform_4, window_bounds = array<i64: 1, 128>}, {transform_indices = @transform_5, window_bounds = array<i64: 128, 32>}, {pipeline_mode = #tpu.pipeline_mode<synchronous>, transform_indices = @transform_6, window_bounds = array<i64: 1, 32>}, {transform_indices = @transform_7, window_bounds = array<i64: 16, 32>}]} {
    %c0_i32 = arith.constant 0 : i32
    %0 = arith.cmpi eq, %arg1, %c0_i32 : i32
    %1 = arith.extui %0 : i1 to i32
    %c0_i32_0 = arith.constant 0 : i32
    %2 = arith.cmpi ne, %1, %c0_i32_0 : i32
    scf.if %2 {
      %c0_19 = arith.constant 0 : index
      %c0_20 = arith.constant 0 : index
      %31 = vector.load %arg2[%c0_19, %c0_20] : memref<16x32xf32, #tpu.memory_space<vmem>>, vector<16x32xf32>
      %c0_21 = arith.constant 0 : index
      %c0_22 = arith.constant 0 : index
      %32 = vector.load %arg3[%c0_21, %c0_22] : memref<1x32xf32, #tpu.memory_space<vmem>>, vector<1x32xf32>
      %c0_23 = arith.constant 0 : index
      %c0_24 = arith.constant 0 : index
      %33 = vector.load %arg4[%c0_23, %c0_24] : memref<1x32xf32, #tpu.memory_space<vmem>>, vector<1x32xf32>
      %cst_25 = arith.constant dense<0.000000e+00> : vector<16xf32>
      %34 = vector.multi_reduction <add>, %31, %cst_25 [1] : vector<16x32xf32> to vector<16xf32>
      %35 = vector.shape_cast %34 : vector<16xf32> to vector<16x1xf32>
      %cst_26 = arith.constant 3.200000e+01 : f32
      %36 = vector.broadcast %cst_26 : f32 to vector<16x1xf32>
      %37 = arith.divf %35, %36 : vector<16x1xf32>
      %38 = vector.broadcast %37 : vector<16x1xf32> to vector<16x32xf32>
      %39 = arith.subf %31, %38 : vector<16x32xf32>
      %40 = arith.mulf %39, %39 : vector<16x32xf32>
      %cst_27 = arith.constant dense<0.000000e+00> : vector<16xf32>
      %41 = vector.multi_reduction <add>, %40, %cst_27 [1] : vector<16x32xf32> to vector<16xf32>
      %42 = vector.shape_cast %41 : vector<16xf32> to vector<16x1xf32>
      %cst_28 = arith.constant 3.200000e+01 : f32
      %43 = vector.broadcast %cst_28 : f32 to vector<16x1xf32>
      %44 = arith.divf %42, %43 : vector<16x1xf32>
      %45 = vector.broadcast %37 : vector<16x1xf32> to vector<16x32xf32>
      %46 = arith.subf %31, %45 : vector<16x32xf32>
      %cst_29 = arith.constant 9.99999974E-6 : f32
      %47 = vector.broadcast %cst_29 : f32 to vector<16x1xf32>
      %48 = arith.addf %44, %47 : vector<16x1xf32>
      %49 = math.rsqrt %48 : vector<16x1xf32>
      %50 = vector.broadcast %49 : vector<16x1xf32> to vector<16x32xf32>
      %51 = arith.mulf %46, %50 : vector<16x32xf32>
      %52 = vector.broadcast %32 : vector<1x32xf32> to vector<16x32xf32>
      %53 = arith.mulf %51, %52 : vector<16x32xf32>
      %54 = vector.broadcast %33 : vector<1x32xf32> to vector<16x32xf32>
      %55 = arith.addf %53, %54 : vector<16x32xf32>
      %56 = arith.truncf %55 : vector<16x32xf32> to vector<16x32xbf16>
      %c0_30 = arith.constant 0 : index
      %c0_31 = arith.constant 0 : index
      %57 = vector.load %arg10[%c0_30, %c0_31] : memref<16x32xbf16, #tpu.memory_space<vmem>>, vector<16x32xbf16>
      tpu.vector_store %arg10[%c0_30, %c0_31], %56 {strides = array<i32>} : memref<16x32xbf16, #tpu.memory_space<vmem>>, vector<16x32xbf16>,
      %cst_32 = arith.constant 0.000000e+00 : f32
      %58 = vector.broadcast %cst_32 : f32 to vector<16x32xf32>
      %c0_33 = arith.constant 0 : index
      %c0_34 = arith.constant 0 : index
      %59 = vector.load %arg11[%c0_33, %c0_34] : memref<16x32xf32, #tpu.memory_space<vmem>>, vector<16x32xf32>
      tpu.vector_store %arg11[%c0_33, %c0_34], %58 {strides = array<i32>} : memref<16x32xf32, #tpu.memory_space<vmem>>, vector<16x32xf32>,
    } else {
    }
    %c0 = arith.constant 0 : index
    %c0_1 = arith.constant 0 : index
    %3 = vector.load %arg10[%c0, %c0_1] : memref<16x32xbf16, #tpu.memory_space<vmem>>, vector<16x32xbf16>
    %c0_2 = arith.constant 0 : index
    %c0_3 = arith.constant 0 : index
    %4 = vector.load %arg5[%c0_2, %c0_3] : memref<32x128xbf16, #tpu.memory_space<vmem>>, vector<32x128xbf16>
    %cst = arith.constant dense<0.000000e+00> : vector<16x128xf32>
    %5 = tpu.matmul %3, %4, %cst {dimension_numbers = #tpu.dot_dimension_numbers<[1], [0], [0], [1], [0, 0, 1, 1], [], []>} : vector<16x32xbf16>, vector<32x128xbf16>, vector<16x128xf32> -> vector<16x128xf32>
    %c0_4 = arith.constant 0 : index
    %c0_5 = arith.constant 0 : index
    %6 = vector.load %arg6[%c0_4, %c0_5] : memref<1x128xf32, #tpu.memory_space<vmem>>, vector<1x128xf32>
    %7 = vector.broadcast %6 : vector<1x128xf32> to vector<16x128xf32>
    %8 = arith.addf %5, %7 : vector<16x128xf32>
    %cst_6 = arith.constant 5.000000e-01 : f32
    %9 = vector.broadcast %cst_6 : f32 to vector<16x128xf32>
    %10 = arith.mulf %9, %8 : vector<16x128xf32>
    %cst_7 = arith.constant 4.471500e-02 : f32
    %11 = vector.broadcast %cst_7 : f32 to vector<16x128xf32>
    %12 = arith.mulf %11, %8 : vector<16x128xf32>
    %13 = arith.mulf %12, %8 : vector<16x128xf32>
    %14 = arith.mulf %13, %8 : vector<16x128xf32>
    %15 = arith.addf %8, %14 : vector<16x128xf32>
    %cst_8 = arith.constant 0.797884583 : f32
    %16 = vector.broadcast %cst_8 : f32 to vector<16x128xf32>
    %17 = arith.mulf %16, %15 : vector<16x128xf32>
    %18 = math.tanh %17 : vector<16x128xf32>
    %cst_9 = arith.constant 1.000000e+00 : f32
    %19 = vector.broadcast %cst_9 : f32 to vector<16x128xf32>
    %20 = arith.addf %19, %18 : vector<16x128xf32>
    %21 = arith.mulf %10, %20 : vector<16x128xf32>
    %c0_10 = arith.constant 0 : index
    %c0_11 = arith.constant 0 : index
    %22 = vector.load %arg11[%c0_10, %c0_11] : memref<16x32xf32, #tpu.memory_space<vmem>>, vector<16x32xf32>
    %23 = arith.truncf %21 : vector<16x128xf32> to vector<16x128xbf16>
    %c0_12 = arith.constant 0 : index
    %c0_13 = arith.constant 0 : index
    %24 = vector.load %arg7[%c0_12, %c0_13] : memref<128x32xbf16, #tpu.memory_space<vmem>>, vector<128x32xbf16>
    %cst_14 = arith.constant dense<0.000000e+00> : vector<16x32xf32>
    %25 = tpu.matmul %23, %24, %cst_14 {dimension_numbers = #tpu.dot_dimension_numbers<[1], [0], [0], [1], [0, 0, 1, 1], [], []>} : vector<16x128xbf16>, vector<128x32xbf16>, vector<16x32xf32> -> vector<16x32xf32>
    %26 = arith.addf %22, %25 : vector<16x32xf32>
    %c0_15 = arith.constant 0 : index
    %c0_16 = arith.constant 0 : index
    %27 = vector.load %arg11[%c0_15, %c0_16] : memref<16x32xf32, #tpu.memory_space<vmem>>, vector<16x32xf32>
    tpu.vector_store %arg11[%c0_15, %c0_16], %26 {strides = array<i32>} : memref<16x32xf32, #tpu.memory_space<vmem>>, vector<16x32xf32>,
    %c0_i32_17 = arith.constant 0 : i32
    %28 = arith.cmpi eq, %arg1, %c0_i32_17 : i32
    %29 = arith.extui %28 : i1 to i32
    %c0_i32_18 = arith.constant 0 : i32
    %30 = arith.cmpi ne, %29, %c0_i32_18 : i32
    scf.if %30 {
      %c0_19 = arith.constant 0 : index
      %c0_20 = arith.constant 0 : index
      %31 = vector.load %arg2[%c0_19, %c0_20] : memref<16x32xf32, #tpu.memory_space<vmem>>, vector<16x32xf32>
      %c0_21 = arith.constant 0 : index
      %c0_22 = arith.constant 0 : index
      %32 = vector.load %arg11[%c0_21, %c0_22] : memref<16x32xf32, #tpu.memory_space<vmem>>, vector<16x32xf32>
      %33 = arith.addf %31, %32 : vector<16x32xf32>
      %c0_23 = arith.constant 0 : index
      %c0_24 = arith.constant 0 : index
      %34 = vector.load %arg8[%c0_23, %c0_24] : memref<1x32xf32, #tpu.memory_space<vmem>>, vector<1x32xf32>
      %35 = vector.broadcast %34 : vector<1x32xf32> to vector<16x32xf32>
      %36 = arith.addf %33, %35 : vector<16x32xf32>
      %c0_25 = arith.constant 0 : index
      %c0_26 = arith.constant 0 : index
      %37 = vector.load %arg9[%c0_25, %c0_26] : memref<16x32xf32, #tpu.memory_space<vmem>>, vector<16x32xf32>
      tpu.vector_store %arg9[%c0_25, %c0_26], %36 {strides = array<i32>} : memref<16x32xf32, #tpu.memory_space<vmem>>, vector<16x32xf32>,
    } else {
    }
    return
  }
  func.func @transform_0(%arg0: i32, %arg1: i32) -> (i32, i32) {
    %c0_i32 = arith.constant 0 : i32
    %c0_i32_0 = arith.constant 0 : i32
    return %arg0, %c0_i32 : i32, i32
  }
  func.func @transform_1(%arg0: i32, %arg1: i32) -> (i32, i32) {
    %c0_i32 = arith.constant 0 : i32
    %c0_i32_0 = arith.constant 0 : i32
    %c0_i32_1 = arith.constant 0 : i32
    return %c0_i32, %c0_i32_0 : i32, i32
  }
  func.func @transform_2(%arg0: i32, %arg1: i32) -> (i32, i32) {
    %c0_i32 = arith.constant 0 : i32
    %c0_i32_0 = arith.constant 0 : i32
    %c0_i32_1 = arith.constant 0 : i32
    return %c0_i32, %c0_i32_0 : i32, i32
  }
  func.func @transform_3(%arg0: i32, %arg1: i32) -> (i32, i32) {
    %c0_i32 = arith.constant 0 : i32
    %c0_i32_0 = arith.constant 0 : i32
    return %c0_i32, %arg1 : i32, i32
  }
  func.func @transform_4(%arg0: i32, %arg1: i32) -> (i32, i32) {
    %c0_i32 = arith.constant 0 : i32
    %c0_i32_0 = arith.constant 0 : i32
    return %c0_i32, %arg1 : i32, i32
  }
  func.func @transform_5(%arg0: i32, %arg1: i32) -> (i32, i32) {
    %c0_i32 = arith.constant 0 : i32
    %c0_i32_0 = arith.constant 0 : i32
    return %arg1, %c0_i32 : i32, i32
  }
  func.func @transform_6(%arg0: i32, %arg1: i32) -> (i32, i32) {
    %c0_i32 = arith.constant 0 : i32
    %c0_i32_0 = arith.constant 0 : i32
    %c0_i32_1 = arith.constant 0 : i32
    return %c0_i32, %c0_i32_0 : i32, i32
  }
  func.func @transform_7(%arg0: i32, %arg1: i32) -> (i32, i32) {
    %c0_i32 = arith.constant 0 : i32
    %c0_i32_0 = arith.constant 0 : i32
    return %arg0, %c0_i32 : i32, i32
  }
}

</mosaic_0001>

<bundles_post_ra>
// kernel: benchmark_lm_forward.14
= control target key start
LH: loop header
LB: loop body
LE: loop exit
PB: predicated region body
PF: predicated region fallthrough
CT: control target
= control target key end

     0   :  { %vm18_vm0 = vcmask 261120   ;;  %vm70_vm1 = vcmask 257024   ;;  %s129_s0 = inlined_call_operand.vmem [shape: f32[16,32], index: 0, kind: input, shape index: {}]   ;;  %s130_s1 = inlined_call_operand.vmem [shape: f32[1,32], index: 1, kind: input, shape index: {}]   ;;  %s131_s2 = inlined_call_operand.vmem [shape: f32[1,32], index: 2, kind: input, shape index: {}]   ;;  %s132_s3 = inlined_call_operand.vmem [shape: bf16[16,32], index: 3, kind: output, shape index: {}]  }
   0x1   :  { %v14_v0 = vld [vmem:[%s129_s0] sm:$0xff]  ;;  %v15_v1 = vld [vmem:[%s129_s0 + $0x8] sm:$0xff] }
   0x2   :  { %v19_v2 = vsel %vm18_vm0, %v14_v0, 0.0  ;;  %v22_v3 = vsel %vm18_vm0, %v15_v1, 0.0  ;;  %v77_v21 = vld [vmem:[%s130_s1] ss:$0 sm:$0xff] }
   0x3   :  { %20 = vadd.xlane.f32.xlu0 %v19_v2  ;;  %v78_v23 = vld [vmem:[%s131_s2] ss:$0 sm:$0xff] }
   0x7   :  { %23 = vadd.xlane.f32.xlu0 %v22_v3 }
  0x90   :  { %v21_v4 = vpop.xlane.xlu0 %20 }
  0x91   :  { %v26_v5 = vmul.f32 0.03125, %v21_v4 }
  0x93   :  { %v28_v6 = vsub.f32 %v14_v0, %v26_v5 }
  0x94   :  { %v24_v7 = vpop.xlane.xlu0 %23 }
  0x95   :  { %v27_v8 = vmul.f32 0.03125, %v24_v7  ;;  %v30_v9 = vmul.f32 %v28_v6, %v28_v6 }
  0x97   :  { %v29_v10 = vsub.f32 %v15_v1, %v27_v8  ;;  %v32_v11 = vsel %vm18_vm0, %v30_v9, 0.0 }
  0x98   :  { %33 = vadd.xlane.f32.xlu1 %v32_v11 }
  0x99   :  { %v31_v12 = vmul.f32 %v29_v10, %v29_v10 }
  0x9b   :  { %v35_v13 = vsel %vm18_vm0, %v31_v12, 0.0 }
  0x9c   :  { %36 = vadd.xlane.f32.xlu1 %v35_v13 }
 0x125   :  { %v34_v14 = vpop.xlane.xlu1 %33 }
 0x126   :  { %v38_v15 = vmul.f32 0.03125, %v34_v14 }
 0x128   :  { %v40_v16 = vadd.f32 1e-05, %v38_v15 }
 0x129   :  { %v37_v17 = vpop.xlane.xlu1 %36 }
 0x12a   :  { %83 = vrsqrt.f32 %v40_v16  ;;  %v39_v18 = vmul.f32 0.03125, %v37_v17 }
 0x12c   :  { %v41_v19 = vadd.f32 1e-05, %v39_v18 }
 0x12e   :  { %85 = vrsqrt.f32 %v41_v19 }
 0x134   :  { %v84_v20 = vpop.eup %83 }
 0x135   :  { %v44_v22 = vmul.f32 %v84_v20, %v28_v6 }
 0x137   :  { %v52_v24 = vmul.f32 %v77_v21, %v44_v22 }
 0x138   :  { %v86_v25 = vpop.eup %85 }
 0x139   :  { %v60_v26 = vadd.f32 %v78_v23, %v52_v24  ;;  %v45_v27 = vmul.f32 %v86_v25, %v29_v10 }
 0x13b   :  { %v81_v28 = vpack.c.bf16 %v60_v26, %v60_v26  ;;  %v53_v29 = vmul.f32 %v77_v21, %v45_v27 }
 0x13d   :  { %71 = vst.msk [vmem:[%s132_s3] sm:$0xf] %vm70_vm1, %v81_v28  ;;  %v61_v30 = vadd.f32 %v78_v23, %v53_v29 }
 0x13f   :  { %v82_v31 = vpack.c.bf16 %v61_v30, %v61_v30 }
 0x141   :  { %72 = vst.msk [vmem:[%s132_s3 + $0x4] sm:$0xf] %vm70_vm1, %v82_v31 }

// kernel: benchmark_lm_forward.15
= control target key start
LH: loop header
LB: loop body
LE: loop exit
PB: predicated region body
PF: predicated region fallthrough
CT: control target
= control target key end

     0   :  { %vm19_vm0 = vcmask 261120   ;;  %v150_v0 = vmov 0.0   ;;  %vm151_vm1 = vmmov 0   ;;  %vm118_vm2 = vcmask 257024   ;;  %s195_s1 = inlined_call_operand.vmem [shape: bf16[32,32], index: 1, kind: input, shape index: {}]   ;;  %s196_s0 = inlined_call_operand.vmem [shape: bf16[16,32], index: 0, kind: input, shape index: {}]   ;;  %s197_s2 = inlined_call_operand.vmem [shape: f32[1,32], index: 2, kind: input, shape index: {}]   ;;  %s198_s3 = inlined_call_operand.vmem [shape: bf16[16,32], index: 3, kind: output, shape index: {}]  }
   0x1   :  { %137 = vmatprep.subr.bf16.mxu0 %v150_v0  ;;  %v147_v1 = vld [vmem:[%s195_s1] sm:$0xff]   ;;  %141 = vmatprep.mubr.msk.bf16.mxu0 %vm151_vm1, %v150_v0  ;;  %20 = vst.msk [vmem:[#allocation2] sm:$0xff] %vm19_vm0, %v150_v0  ;;  %21 = vst.msk [vmem:[#allocation2 + $0x8] sm:$0xff] %vm19_vm0, %v150_v0  ;;  %v148_v2 = vld [vmem:[%s195_s1 + $0x8] sm:$0xff]  }
   0x2   :  { %138 = vmatpush3.bf16.msra.mxu0 %v147_v1  ;;  %v149_v3 = vld [vmem:[%s196_s0] sm:$0xff]  }
   0x3   :  { %139 = vmatprep.subr.bf16.mxu0 %v150_v0  ;;  %v129_v12 = vld [vmem:[%s197_s2] ss:$0 sm:$0xff] }
   0x6   :  { %140 = vmatpush3.bf16.msra.mxu0 %v148_v2 }
   0x8   :  { %v22_v4 = vld [vmem:[#allocation2] sm:$0xff]  ;;  %v23_v6 = vld [vmem:[#allocation2 + $0x8] sm:$0xff] }
   0x9   :  { %142 = vmatmul.mubr.msk.bf16.vlgmr.msra.gmra.mrb[0].mxu0 %vm19_vm0, %v149_v3 }
  0xdc   :  { %v85_v5 = vpop.f32.mrb[0].mxu0 }
  0xdd   :  { %v92_v7 = vadd.f32 %v85_v5, %v22_v4  ;;  %v143_v8 = vpop.f32.mrb[1].mxu0 }
  0xde   :  { %v88_v9 = vpop.f32.mrb[2].mxu0 }
  0xdf   :  { %94 = vst.msk [vmem:[#allocation2] sm:$0xff] %vm19_vm0, %v92_v7  ;;  %v93_v10 = vadd.f32 %v88_v9, %v23_v6  ;;  %v144_v11 = vpop.f32.mrb[3].mxu0 }
  0xe1   :  { %95 = vst.msk [vmem:[#allocation2 + $0x8] sm:$0xff] %vm19_vm0, %v93_v10 }
  0xe6   :  { %v99_v13 = vld [vmem:[#allocation2] sm:$0xff] }
  0xe7   :  { %v108_v14 = vadd.f32 %v129_v12, %v99_v13 }
  0xe8   :  { %v100_v15 = vld [vmem:[#allocation2 + $0x8] sm:$0xff] }
  0xe9   :  { %v132_v16 = vpack.c.bf16 %v108_v14, %v108_v14  ;;  %v109_v17 = vadd.f32 %v129_v12, %v100_v15 }
  0xeb   :  { %119 = vst.msk [vmem:[%s198_s3] sm:$0xf] %vm118_vm2, %v132_v16  ;;  %v133_v18 = vpack.c.bf16 %v109_v17, %v109_v17 }
  0xed   :  { %120 = vst.msk [vmem:[%s198_s3 + $0x4] sm:$0xf] %vm118_vm2, %v133_v18 }

// kernel: benchmark_lm_forward.18
= control target key start
LH: loop header
LB: loop body
LE: loop exit
PB: predicated region body
PF: predicated region fallthrough
CT: control target
= control target key end

     0   :  { %s638_s12 = smov 0   ;;  %s640_s13 = smov 0   ;;  %s694_s0 = inlined_call_operand.vmem [shape: bf16[8,8,8], index: 0, kind: input, shape index: {}]   ;;  %s695_s1 = inlined_call_operand.vmem [shape: bf16[8,8,8], index: 1, kind: input, shape index: {}]   ;;  %s696_s2 = inlined_call_operand.vmem [shape: bf16[8,8,8], index: 2, kind: input, shape index: {}]   ;;  %s697_s3 = inlined_call_operand.vmem [shape: bf16[8,8,8], index: 3, kind: output, shape index: {}]  }
   0x1   :  { %s642_s14 = smov 0  }
   0x2 LB: > { %s32_s15 = sadd.s32 1, %s608_s13  ;;  %p529_p0 = scmp.ge.s32.totalorder %s612_s14, 1  ;;  %s612_s14 = sphi %s642_s14, %s13_s14   ;;  %s608_s13 = sphi %s640_s13, %s699_s13   ;;  %s604_s12 = sphi %s638_s12, %s698_s12  }
   0x3   : > { %p34_p1 = scmp.ge.s32.totalorder %s32_s15, 8  ;;  %p190_p2 = scmp.lt.s32.totalorder %s612_s14, 9 }
   0x5   : > { %s701_s15 = smov (%p34_p1, %s32_s15), 0  ;;  %p191_p3 = pnand %p529_p0, %p190_p2 }
   0x6   : > { %p232_p4 = scmp.lt.s32.totalorder (!%p191_p3), %s604_s12, 7  ;;  %vm268_vm0 = vcmask (!%p191_p3), 64512   ;;  %v614_v0 = vmov (!%p191_p3), 0.0   ;;  %vm615_vm1 = vmmov (!%p191_p3), 0   ;;  %vm265_vm2 = vcmask (!%p191_p3), 7168  }
   0x7   : > { %194 = sbr.rel (%p191_p3) target bundleno = 825 (0x339), region = 32  ;;  %542 = vmatprep.subr.bf16.mxu0 (!%p191_p3), %v614_v0  ;;  %269 = vst.msk [vmem:[#allocation4] sm:$0xff] (!%p191_p3), %vm268_vm0, %v614_v0  ;;  %544 = vmatprep.mubr.msk.bf16.mxu0 (!%p191_p3), %vm615_vm1, %v614_v0  ;;  %v616_v4 = vmov (!%p191_p3), -inf   ;;  %v617_v11 = vmov (!%p191_p3), 0   ;;  %vm356_vm3 = vcmask (!%p191_p3), 1043456   ;;  %vm416_vm4 = vcmask (!%p191_p3), 60416  }
   0x8   : > { %548 = vmatprep.subr.bf16.mxu1 (!%p191_p3), %v614_v0  ;;  %550 = vmatprep.mubr.msk.bf16.mxu1 (!%p191_p3), %vm615_vm1, %v614_v0  ;;  %266 = vst.msk [vmem:[#allocation2] sm:$0xff] (!%p191_p3), %vm265_vm2, %v616_v4  ;;  %267 = vst.msk [vmem:[#allocation3] sm:$0xff] (!%p191_p3), %vm265_vm2, %v614_v0 }
   0x9   : > { %582 = vset.pattern.permute.xlu0 (!%p191_p3), %v617_v11  ;;  %583 = vset.pattern.permute.xlu1 (!%p191_p3), %v617_v11 }
   0xe   : > { %s703_s12 = smov (!%p232_p4, %s604_s12), 7  ;;  %v345_v32 = vld [vmem:[#allocation4] sm:$0xff] }
   0xf   : > { %s657_s16 = sshll.u32 %s703_s12, 2  ;;  %v321_v12 = vld [vmem:[#allocation2] sm:$0xff]  ;;  %v337_v26 = vld [vmem:[#allocation3] sm:$0xff] }
  0x10   : > { %s245_s19 = scalar_lea.vmem %s695_s1, %s657_s16  ;;  %s238_s22 = scalar_lea.vmem %s694_s0, %s657_s16 }
  0x11   : > { %v271_v1 = vld [vmem:[%s245_s19] sm:$0xf]  ;;  %s252_s25 = scalar_lea.vmem %s696_s2, %s657_s16  ;;  %s259_s28 = scalar_lea.vmem %s697_s3, %s657_s16 }
  0x12   : > { %v278_v2 = vsel %vm268_vm0, %v271_v1, 0  ;;  %v270_v3 = vld [vmem:[%s238_s22] sm:$0xf] }
  0x13   : > { %543 = vmatpush3.bf16.xpose.msra.mxu0 %v278_v2  ;;  %v272_v16 = vld [vmem:[%s252_s25] sm:$0xf] }
  0x14   : > { %v358_v17 = vsel %vm356_vm3, %v272_v16, 0 }
  0x15   : > { %549 = vmatpush3.bf16.msra.mxu1 %v358_v17 }
  0x1a   : > { %545 = vmatmul.mubr.msk.bf16.vlgmr.msra.gmra.mrb[0].mxu0 %vm268_vm0, %v270_v3 }
  0xed   : > { %v314_v5 = vpop.f32.mrb[0].mxu0 }
  0xee   : > { %v320_v6 = vmul.f32 0.35355338, %v314_v5  ;;  %v546_v7 = vpop.f32.mrb[1].mxu0 }
  0xef   : > { %v317_v8 = vpop.f32.mrb[2].mxu0 }
  0xf0   : > { %v547_v9 = vpop.f32.mrb[3].mxu0  ;;  %v322_v10 = vsel %vm268_vm0, %v320_v6, -inf }
  0xf1   : > { %323 = vmax.xlane.f32.xlu0 %v322_v10 }
 0x17e   : > { %v324_v13 = vpop.xlane.xlu0 %323 }
 0x17f   : > { %v325_v14 = vmax.f32 %v321_v12, %v324_v13 }
 0x181   : > { %v326_v15 = vsub.f32 %v321_v12, %v325_v14  ;;  %402 = vst.msk [vmem:[#allocation2] sm:$0xff] %vm265_vm2, %v325_v14  ;;  %331 = vperm.xlu0 %582, %v325_v14  }
 0x183   : > { %v327_v24 = vmul.f32 1.442695, %v326_v15 }
 0x200   : > { %v332_v18 = vpop.permute.xlu0 %331 }
 0x201   : > { %v334_v19 = vsub.f32 %v320_v6, %v332_v18 }
 0x203   : > { %v335_v20 = vmul.f32 1.442695, %v334_v19 }
 0x205   : > { %584 = vpow2.f32 %v335_v20 }
 0x206   : > { %586 = vpow2.f32 %v327_v24 }
 0x20f   : > { %v585_v21 = vpop.eup %584 }
 0x210   : > { %v339_v22 = vsel %vm268_vm0, %v585_v21, 0.0  ;;  %v352_v23 = vpack.c.bf16 %v585_v21, %v585_v21  ;;  %v587_v25 = vpop.eup %586 }
 0x211   : > { %340 = vadd.xlane.f32.xlu1 %v339_v22  ;;  %v338_v27 = vmul.f32 %v587_v25, %v337_v26 }
 0x212   : > { %551 = vmatmul.mubr.msk.bf16.vlgmr.msra.gmra.mrb[0].mxu1 %vm268_vm0, %v352_v23 }
 0x222   : > { %348 = vperm.xlu1 %583, %v587_v25  }
 0x29e   : > { %v341_v28 = vpop.xlane.xlu1 %340 }
 0x29f   : > { %v342_v29 = vadd.f32 %v341_v28, %v338_v27 }
 0x2a1   : > { %344 = vst.msk [vmem:[#allocation3] sm:$0xff] %vm265_vm2, %v342_v29 }
 0x2a2   : > { %v349_v33 = vpop.permute.xlu1 %348 }
 0x2a3   : > { %v351_v34 = vmul.f32 %v349_v33, %v345_v32 }
 0x2a8   : > { %v406_v30 = vld [vmem:[#allocation3] sm:$0xff] }
 0x2a9   : > { %588 = vrcp.f32 %v406_v30 }
 0x2b3   : > { %v589_v31 = vpop.eup %588 }
 0x2b4   : > { %411 = vperm.xlu1 %583, %v589_v31  }
 0x2e5   : > { %v394_v35 = vpop.f32.mrb[0].mxu1 }
 0x2e6   : > { %v400_v36 = vadd.f32 %v394_v35, %v351_v34  ;;  %v552_v37 = vpop.f32.mrb[1].mxu1 }
 0x2e7   : > { %v397_v38 = vpop.f32.mrb[2].mxu1 }
 0x2e8   : > { %401 = vst.msk [vmem:[#allocation4] sm:$0xff] %vm268_vm0, %v400_v36  ;;  %v553_v39 = vpop.f32.mrb[3].mxu1 }
 0x2ef   : > { %v408_v40 = vld [vmem:[#allocation4] sm:$0xff] }
 0x333   : > { %v412_v41 = vpop.permute.xlu1 %411 }
 0x334   : > { %v414_v42 = vmul.f32 %v412_v41, %v408_v40 }
 0x336   : > { %v415_v43 = vpack.c.bf16 %v414_v42, %v414_v42 }
 0x338   : > { %417 = vst.msk [vmem:[%s259_s28] sm:$0xf] %vm416_vm4, %v415_v43 }
 0x339 PF: > { %s13_s14 = sadd.s32 1, %s612_s14   ;;  %s698_s12 = smov %s608_s13 }
 0x33a   : > { %p10_p5 = scmp.ge.s32.totalorder %s13_s14, 10   ;;  %s699_s13 = smov %s701_s15 }
 0x33c   :  { %12 = sbr.rel (!%p10_p5) target bundleno = 2 (0x2), region = 76 }

// kernel: benchmark_lm_forward.19
= control target key start
LH: loop header
LB: loop body
LE: loop exit
PB: predicated region body
PF: predicated region fallthrough
CT: control target
= control target key end

     0   :  { %vm22_vm0 = vcmask 261120   ;;  %v144_v0 = vmov 0.0   ;;  %vm145_vm1 = vmmov 0   ;;  %s202_s1 = inlined_call_operand.vmem [shape: bf16[32,32], index: 1, kind: input, shape index: {}]   ;;  %s203_s0 = inlined_call_operand.vmem [shape: bf16[16,32], index: 0, kind: input, shape index: {}]   ;;  %s204_s2 = inlined_call_operand.vmem [shape: f32[1,32], index: 2, kind: input, shape index: {}]   ;;  %s205_s3 = inlined_call_operand.vmem [shape: f32[16,32], index: 3, kind: input, shape index: {}]   ;;  %s206_s4 = inlined_call_operand.vmem [shape: f32[16,32], index: 4, kind: output, shape index: {}]  }
   0x1   :  { %131 = vmatprep.subr.bf16.mxu0 %v144_v0  ;;  %v141_v1 = vld [vmem:[%s202_s1] sm:$0xff]   ;;  %135 = vmatprep.mubr.msk.bf16.mxu0 %vm145_vm1, %v144_v0  ;;  %23 = vst.msk [vmem:[#allocation2] sm:$0xff] %vm22_vm0, %v144_v0  ;;  %24 = vst.msk [vmem:[#allocation2 + $0x8] sm:$0xff] %vm22_vm0, %v144_v0  ;;  %v142_v2 = vld [vmem:[%s202_s1 + $0x8] sm:$0xff]  }
   0x2   :  { %132 = vmatpush3.bf16.msra.mxu0 %v141_v1  ;;  %v143_v3 = vld [vmem:[%s203_s0] sm:$0xff]   ;;  %v114_v17 = vld [vmem:[%s205_s3 + $0x8] sm:$0xff] }
   0x3   :  { %133 = vmatprep.subr.bf16.mxu0 %v144_v0  ;;  %v127_v12 = vld [vmem:[%s204_s2] ss:$0 sm:$0xff] }
   0x4   :  { %v113_v14 = vld [vmem:[%s205_s3] sm:$0xff] }
   0x6   :  { %134 = vmatpush3.bf16.msra.mxu0 %v142_v2 }
   0x8   :  { %v25_v4 = vld [vmem:[#allocation2] sm:$0xff]  ;;  %v26_v6 = vld [vmem:[#allocation2 + $0x8] sm:$0xff] }
   0x9   :  { %136 = vmatmul.mubr.msk.bf16.vlgmr.msra.gmra.mrb[0].mxu0 %vm22_vm0, %v143_v3 }
  0xdc   :  { %v88_v5 = vpop.f32.mrb[0].mxu0 }
  0xdd   :  { %v95_v7 = vadd.f32 %v88_v5, %v25_v4  ;;  %v137_v8 = vpop.f32.mrb[1].mxu0 }
  0xde   :  { %v91_v9 = vpop.f32.mrb[2].mxu0 }
  0xdf   :  { %97 = vst.msk [vmem:[#allocation2] sm:$0xff] %vm22_vm0, %v95_v7  ;;  %v96_v10 = vadd.f32 %v91_v9, %v26_v6  ;;  %v138_v11 = vpop.f32.mrb[3].mxu0 }
  0xe1   :  { %98 = vst.msk [vmem:[#allocation2 + $0x8] sm:$0xff] %vm22_vm0, %v96_v10 }
  0xe6   :  { %v102_v13 = vld [vmem:[#allocation2] sm:$0xff] }
  0xe7   :  { %v111_v15 = vadd.f32 %v127_v12, %v102_v13 }
  0xe8   :  { %v103_v16 = vld [vmem:[#allocation2 + $0x8] sm:$0xff] }
  0xe9   :  { %v115_v18 = vadd.f32 %v113_v14, %v111_v15  ;;  %v112_v19 = vadd.f32 %v127_v12, %v103_v16 }
  0xeb   :  { %117 = vst.msk [vmem:[%s206_s4] sm:$0xff] %vm22_vm0, %v115_v18  ;;  %v116_v20 = vadd.f32 %v114_v17, %v112_v19 }
  0xed   :  { %118 = vst.msk [vmem:[%s206_s4 + $0x8] sm:$0xff] %vm22_vm0, %v116_v20 }

// kernel: benchmark_lm_forward.20
= control target key start
LH: loop header
LB: loop body
LE: loop exit
PB: predicated region body
PF: predicated region fallthrough
CT: control target
= control target key end

     0   :  { %vm35_vm0 = vcmask 261120   ;;  %v381_v15 = vmov 0.0   ;;  %vm382_vm1 = vmmov 0   ;;  %s499_s0 = inlined_call_operand.vmem [shape: f32[16,32], index: 0, kind: input, shape index: {}]   ;;  %s500_s3 = inlined_call_operand.vmem [shape: bf16[32,128], index: 3, kind: input, shape index: {}]   ;;  %s501_s1 = inlined_call_operand.vmem [shape: f32[1,32], index: 1, kind: input, shape index: {}]   ;;  %s502_s2 = inlined_call_operand.vmem [shape: f32[1,32], index: 2, kind: input, shape index: {}]   ;;  %s503_s5 = inlined_call_operand.vmem [shape: bf16[128,32], index: 5, kind: input, shape index: {}]   ;;  %s504_s4 = inlined_call_operand.vmem [shape: f32[1,128], index: 4, kind: input, shape index: {}]   ;;  %s505_s6 = inlined_call_operand.vmem [shape: f32[1,32], index: 6, kind: input, shape index: {}]   ;;  %s506_s7 = inlined_call_operand.vmem [shape: f32[16,32], index: 7, kind: output, shape index: {}]  }
   0x1   :  { %v426_v0 = vld [vmem:[%s499_s0] sm:$0xff]  ;;  %v431_v1 = vld [vmem:[%s499_s0 + $0x8] sm:$0xff]  ;;  %333 = vmatprep.subr.bf16.mxu0 %v381_v15  ;;  %81 = vst.msk [vmem:[#allocation3] sm:$0xff] %vm35_vm0, %v381_v15  ;;  %82 = vst.msk [vmem:[#allocation3 + $0x8] sm:$0xff] %vm35_vm0, %v381_v15  ;;  %341 = vmatprep.subr.bf16.mxu1 %v381_v15 }
   0x2   :  { %v36_v2 = vsel %vm35_vm0, %v426_v0, 0.0  ;;  %v39_v3 = vsel %vm35_vm0, %v431_v1, 0.0  ;;  %v363_v14 = vld [vmem:[%s500_s3] sm:$0xff]   ;;  %v364_v16 = vld [vmem:[%s500_s3 + $0x8] sm:$0xff]   ;;  %337 = vmatprep.mubr.msk.bf16.mxu0 %vm382_vm1, %v381_v15  ;;  %357 = vmatprep.mubr.msk.bf16.mxu1 %vm382_vm1, %v381_v15  ;;  %v367_v37 = vld [vmem:[%s503_s5 + $0x10] sm:$0xff]  }
   0x3   :  { %37 = vadd.xlane.f32.xlu0 %v36_v2  ;;  %334 = vmatpush3.bf16.msra.mxu0 %v363_v14  ;;  %v306_v25 = vld [vmem:[%s501_s1] ss:$0 sm:$0xff]  ;;  %v366_v36 = vld [vmem:[%s503_s5 + $0x8] sm:$0xff]   ;;  %v368_v38 = vld [vmem:[%s503_s5 + $0x18] sm:$0xff]  }
   0x4   :  { %335 = vmatprep.subr.bf16.mxu0 %v381_v15  ;;  %v307_v29 = vld [vmem:[%s502_s2] ss:$0 sm:$0xff]  ;;  %v370_v40 = vld [vmem:[%s503_s5 + $0x28] sm:$0xff]   ;;  %v371_v41 = vld [vmem:[%s503_s5 + $0x30] sm:$0xff]  }
   0x5   :  { %v365_v35 = vld [vmem:[%s503_s5] sm:$0xff]   ;;  %v372_v42 = vld [vmem:[%s503_s5 + $0x38] sm:$0xff]  }
   0x6   :  { %342 = vmatpush3.bf16.msra.mxu1 %v365_v35  ;;  %v369_v39 = vld [vmem:[%s503_s5 + $0x20] sm:$0xff]  }
   0x7   :  { %40 = vadd.xlane.f32.xlu0 %v39_v3  ;;  %336 = vmatpush3.bf16.msra.mxu0 %v364_v16  ;;  %v308_v43 = vld [vmem:[%s504_s4] ss:$0 sm:$0xff] }
   0x8   :  { %343 = vmatprep.subr.bf16.mxu1 %v381_v15  ;;  %v320_v16 = vld [vmem:[%s505_s6] ss:$0 sm:$0xff] }
   0xa   :  { %344 = vmatpush3.bf16.msra.mxu1 %v366_v36 }
   0xb   :  { %345 = vmatprep.subr.bf16.mxu1 %v381_v15 }
   0xe   :  { %346 = vmatpush3.bf16.msra.mxu1 %v367_v37 }
   0xf   :  { %347 = vmatprep.subr.bf16.mxu1 %v381_v15 }
  0x12   :  { %348 = vmatpush3.bf16.msra.mxu1 %v368_v38 }
  0x13   :  { %349 = vmatprep.subr.bf16.mxu1 %v381_v15 }
  0x16   :  { %350 = vmatpush3.bf16.msra.mxu1 %v369_v39 }
  0x17   :  { %351 = vmatprep.subr.bf16.mxu1 %v381_v15 }
  0x1a   :  { %352 = vmatpush3.bf16.msra.mxu1 %v370_v40 }
  0x1b   :  { %353 = vmatprep.subr.bf16.mxu1 %v381_v15 }
  0x1e   :  { %354 = vmatpush3.bf16.msra.mxu1 %v371_v41 }
  0x1f   :  { %355 = vmatprep.subr.bf16.mxu1 %v381_v15 }
  0x22   :  { %356 = vmatpush3.bf16.msra.mxu1 %v372_v42 }
  0x90   :  { %v38_v4 = vpop.xlane.xlu0 %37 }
  0x91   :  { %v43_v5 = vmul.f32 0.03125, %v38_v4 }
  0x93   :  { %v45_v6 = vsub.f32 %v426_v0, %v43_v5 }
  0x94   :  { %v41_v7 = vpop.xlane.xlu0 %40 }
  0x95   :  { %v44_v8 = vmul.f32 0.03125, %v41_v7  ;;  %v47_v9 = vmul.f32 %v45_v6, %v45_v6  ;;  %v170_v7 = vld [vmem:[#allocation3] sm:$0xff] }
  0x97   :  { %v46_v10 = vsub.f32 %v431_v1, %v44_v8  ;;  %v49_v11 = vsel %vm35_vm0, %v47_v9, 0.0  ;;  %v171_v9 = vld [vmem:[#allocation3 + $0x8] sm:$0xff] }
  0x98   :  { %50 = vadd.xlane.f32.xlu1 %v49_v11 }
  0x99   :  { %v48_v12 = vmul.f32 %v46_v10, %v46_v10 }
  0x9b   :  { %v52_v13 = vsel %vm35_vm0, %v48_v12, 0.0 }
  0x9c   :  { %53 = vadd.xlane.f32.xlu1 %v52_v13 }
 0x125   :  { %v51_v17 = vpop.xlane.xlu1 %50 }
 0x126   :  { %v55_v18 = vmul.f32 0.03125, %v51_v17 }
 0x128   :  { %v57_v19 = vadd.f32 1e-05, %v55_v18 }
 0x129   :  { %v54_v20 = vpop.xlane.xlu1 %53 }
 0x12a   :  { %373 = vrsqrt.f32 %v57_v19  ;;  %v56_v21 = vmul.f32 0.03125, %v54_v20 }
 0x12c   :  { %v58_v22 = vadd.f32 1e-05, %v56_v21 }
 0x12e   :  { %375 = vrsqrt.f32 %v58_v22 }
 0x134   :  { %v374_v23 = vpop.eup %373 }
 0x135   :  { %v61_v24 = vmul.f32 %v374_v23, %v45_v6 }
 0x137   :  { %v69_v27 = vmul.f32 %v306_v25, %v61_v24 }
 0x138   :  { %v376_v26 = vpop.eup %375 }
 0x139   :  { %v62_v28 = vmul.f32 %v376_v26, %v46_v10  ;;  %v77_v31 = vadd.f32 %v307_v29, %v69_v27 }
 0x13b   :  { %v70_v30 = vmul.f32 %v306_v25, %v62_v28 }
 0x13d   :  { %v78_v32 = vadd.f32 %v307_v29, %v70_v30 }
 0x13f   :  { %v79_v33 = vpack.c.bf16 %v78_v32, %v77_v31 }
 0x141   :  { %80 = vst.msk [vmem:[#allocation2] sm:$0xff] %vm35_vm0, %v79_v33 }
 0x148   :  { %v83_v34 = vld [vmem:[#allocation2] sm:$0xff] }
 0x149   :  { %338 = vmatmul.mubr.msk.bf16.vlgmr.msra.gmra.mrb[0].mxu0 %vm35_vm0, %v83_v34 }
 0x21c   :  { %v145_v44 = vpop.f32.mrb[0].mxu0 }
 0x21d   :  { %v146_v45 = vadd.f32 %v308_v43, %v145_v44  ;;  %v339_v46 = vpop.f32.mrb[1].mxu0 }
 0x21e   :  { %v148_v47 = vpop.f32.mrb[2].mxu0 }
 0x21f   :  { %v154_v48 = vmul.f32 0.044715, %v146_v45  ;;  %v149_v49 = vadd.f32 %v308_v43, %v148_v47  ;;  %v340_v50 = vpop.f32.mrb[3].mxu0  ;;  %v152_v63 = vmul.f32 0.5, %v146_v45 }
 0x221   :  { %v156_v51 = vmul.f32 %v154_v48, %v146_v45  ;;  %v155_v52 = vmul.f32 0.044715, %v149_v49  ;;  %v153_v2 = vmul.f32 0.5, %v149_v49 }
 0x223   :  { %v158_v53 = vmul.f32 %v156_v51, %v146_v45  ;;  %v157_v54 = vmul.f32 %v155_v52, %v149_v49 }
 0x225   :  { %v159_v55 = vmul.f32 %v157_v54, %v149_v49  ;;  %v160_v56 = vadd.f32 %v158_v53, %v146_v45 }
 0x227   :  { %v161_v57 = vadd.f32 %v159_v55, %v149_v49  ;;  %v162_v58 = vmul.f32 0.7978846, %v160_v56 }
 0x229   :  { %v163_v59 = vmul.f32 0.7978846, %v161_v57  ;;  %377 = vtanh.f32 %v162_v58 }
 0x22b   :  { %379 = vtanh.f32 %v163_v59 }
 0x233   :  { %v378_v60 = vpop.eup %377 }
 0x234   :  { %v166_v61 = vadd.f32 1.0, %v378_v60 }
 0x235   :  { %v380_v62 = vpop.eup %379 }
 0x236   :  { %v167_v3 = vadd.f32 1.0, %v380_v62  ;;  %v168_v4 = vmul.f32 %v166_v61, %v152_v63 }
 0x238   :  { %v169_v5 = vmul.f32 %v167_v3, %v153_v2 }
 0x23a   :  { %v172_v6 = vpack.c.bf16 %v169_v5, %v168_v4 }
 0x23c   :  { %358 = vmatmul.mubr.bf16.vlgmr.msra.gmra.mrb[0].mxu1 %v172_v6 }
 0x30f   :  { %v271_v8 = vpop.f32.mrb[0].mxu1 }
 0x310   :  { %v278_v10 = vadd.f32 %v271_v8, %v170_v7  ;;  %v359_v11 = vpop.f32.mrb[1].mxu1 }
 0x311   :  { %v274_v12 = vpop.f32.mrb[2].mxu1 }
 0x312   :  { %280 = vst.msk [vmem:[#allocation3] sm:$0xff] %vm35_vm0, %v278_v10  ;;  %v279_v13 = vadd.f32 %v274_v12, %v171_v9  ;;  %v360_v14 = vpop.f32.mrb[3].mxu1 }
 0x314   :  { %281 = vst.msk [vmem:[#allocation3 + $0x8] sm:$0xff] %vm35_vm0, %v279_v13 }
 0x319   :  { %v287_v15 = vld [vmem:[#allocation3] sm:$0xff] }
 0x31a   :  { %v289_v17 = vadd.f32 %v287_v15, %v426_v0 }
 0x31b   :  { %v288_v18 = vld [vmem:[#allocation3 + $0x8] sm:$0xff] }
 0x31c   :  { %v298_v19 = vadd.f32 %v320_v16, %v289_v17  ;;  %v290_v20 = vadd.f32 %v288_v18, %v431_v1 }
 0x31e   :  { %300 = vst.msk [vmem:[%s506_s7] sm:$0xff] %vm35_vm0, %v298_v19  ;;  %v299_v21 = vadd.f32 %v320_v16, %v290_v20 }
 0x320   :  { %301 = vst.msk [vmem:[%s506_s7 + $0x8] sm:$0xff] %vm35_vm0, %v299_v21 }

</bundles_post_ra>
